<compile_context>
chip_gen: v7x
topology: tpu7x:2x2x1
jax: 0.10.0
libtpu: 0.0.40
codegen_flags: <defaults>
</compile_context>

<pallas_src>
import jax
import jax.numpy as jnp
from jax.experimental import pallas as pl
from jax.experimental.pallas import tpu as pltpu


def _round_up(x, m):
    return ((x + m - 1) // m) * m


def movie_rec_kernel(
    ue_ref,     # (TB, E)  bf16  user embeddings
    me_ref,     # (TB, E)  bf16  movie embeddings
    g_ref,      # (TB, G)  bf16  genre features
    bias_ref,   # (TB, 1)  f32   user_bias + movie_bias + fc2_bias + global_bias
    w1u_ref,    # (E, HL)  bf16  fc1 weight, user slice
    w1m_ref,    # (E, HL)  bf16  fc1 weight, movie slice
    wg1_ref,    # (G, HL)  bf16  genreLinear folded into fc1 genre slice
    b1_ref,     # (1, HL)  f32   folded fc1 bias (bg @ W1g + b1)
    w2_ref,     # (1, HL)  f32   fc2 weight as a row
    out_ref,    # (TB, 1)  f32
):
    ue = ue_ref[...]
    me = me_ref[...]
    g = g_ref[...]

    # dotProduct = sum(userEmbeds * movieEmbeds, dim=1); upcast so the
    # elementwise math runs in f32 on all chips (v5e VPU has no bf16).
    dot = jnp.sum(
        ue.astype(jnp.float32) * me.astype(jnp.float32), axis=1, keepdims=True
    )

    # fc1(cat([ue, me, genreLinear(g)])) as a split matmul with the genre
    # linear folded in; bf16 MXU inputs, f32 accumulation.
    h = (
        jnp.dot(ue, w1u_ref[...], preferred_element_type=jnp.float32)
        + jnp.dot(me, w1m_ref[...], preferred_element_type=jnp.float32)
        + jnp.dot(g, wg1_ref[...], preferred_element_type=jnp.float32)
        + b1_ref[...]
    )
    h = jnp.maximum(h, 0.0)  # ReLU
    # TODO(synk): dropout omitted (inference / eval mode -> identity).

    # fc2 has out_features == 1: VPU multiply + lane reduce instead of an
    # N=1 MXU matmul.
    mlp = jnp.sum(h * w2_ref[...], axis=1, keepdims=True)

    out_ref[...] = dot + mlp + bias_ref[...]


def movie_rec_forward(user_idx, movie_idx, genre_feats, params, *, tile_b=512):
    """JAX wrapper: gathers + parameter folding + batch-tiled Pallas kernel."""
    compute_dtype = jnp.bfloat16

    E = params["user_emb"].shape[1]
    HL = params["b1"].shape[1]
    G = genre_feats.shape[1]

    # ---- Parameter prep (pure trace-time algebra, exact in eval mode) ----
    w1 = params["w1"]                                   # (3E, HL) f32
    w1u = w1[0:E].astype(compute_dtype)                 # (E, HL)
    w1m = w1[E:2 * E].astype(compute_dtype)             # (E, HL)
    w1g = w1[2 * E:3 * E]                               # (E, HL) f32
    wg_fold = (params["wg"] @ w1g).astype(compute_dtype)    # (G, HL)
    b1_fold = params["bg"] @ w1g + params["b1"]             # (1, HL) f32
    w2_row = params["w2"].reshape(1, HL)                    # (1, HL) f32
    const = params["b2"][0, 0] + params["gbias"][0, 0]      # scalar f32

    # ---- Gathers (pure indexing) + bias folding ----
    ue = jnp.take(params["user_emb"], user_idx, axis=0).astype(compute_dtype)
    me = jnp.take(params["movie_emb"], movie_idx, axis=0).astype(compute_dtype)
    ub = jnp.take(params["user_bias"], user_idx, axis=0)     # (B, 1) f32
    mb = jnp.take(params["movie_bias"], movie_idx, axis=0)   # (B, 1) f32
    bias = ub + mb + const                                   # (B, 1) f32
    g = genre_feats.astype(compute_dtype)

    B = ue.shape[0]

    # ---- Batch tiling (pad B up to a multiple of the tile) ----
    tb = min(tile_b, _round_up(B, 8))
    b_pad = _round_up(B, tb)
    if b_pad != B:
        pad = b_pad - B
        ue = jnp.pad(ue, ((0, pad), (0, 0)))
        me = jnp.pad(me, ((0, pad), (0, 0)))
        g = jnp.pad(g, ((0, pad), (0, 0)))
        bias = jnp.pad(bias, ((0, pad), (0, 0)))

    grid = (b_pad // tb,)

    def row_spec(d):
        return pl.BlockSpec((tb, d), lambda i: (i, 0))

    def resident(shape):
        return pl.BlockSpec(shape, lambda i: (0, 0))

    flops = 2 * b_pad * HL * (2 * E + G) + 2 * b_pad * (E + HL)
    bytes_accessed = (
        b_pad * (2 * E + G) * 2        # bf16 per-row inputs
        + b_pad * 2 * 4                # f32 bias in + f32 out
        + (2 * E + G) * HL * 2         # bf16 weights
        + 2 * HL * 4                   # f32 b1_fold + w2_row
    )

    out = pl.pallas_call(
        movie_rec_kernel,
        out_shape=jax.ShapeDtypeStruct((b_pad, 1), jnp.float32),
        grid=grid,
        in_specs=[
            row_spec(E),            # ue
            row_spec(E),            # me
            row_spec(G),            # genre
            row_spec(1),            # folded per-row bias
            resident((E, HL)),      # w1u
            resident((E, HL)),      # w1m
            resident((G, HL)),      # wg_fold
            resident((1, HL)),      # b1_fold
            resident((1, HL)),      # w2_row
        ],
        out_specs=pl.BlockSpec((tb, 1), lambda i: (i, 0)),
        compiler_params=pltpu.CompilerParams(
            dimension_semantics=("parallel",),
        ),
        cost_estimate=pl.CostEstimate(
            flops=flops, transcendentals=0, bytes_accessed=bytes_accessed
        ),
    )(ue, me, g, bias, w1u, w1m, wg_fold, b1_fold, w2_row)

    return out[:B, 0]  # squeeze to (B,) like the PyTorch model


def init_params(key, num_users, num_movies, num_genres, hl_size, emb_size):
    ks = jax.random.split(key, 8)
    scale = 0.1
    return {
        "user_emb": scale * jax.random.normal(ks[0], (num_users, emb_size), jnp.float32),
        "movie_emb": scale * jax.random.normal(ks[1], (num_movies, emb_size), jnp.float32),
        "user_bias": scale * jax.random.normal(ks[2], (num_users, 1), jnp.float32),
        "movie_bias": scale * jax.random.normal(ks[3], (num_movies, 1), jnp.float32),
        "gbias": jnp.zeros((1, 1), jnp.float32),
        # Linear weights stored transposed (in_features, out_features).
        "wg": scale * jax.random.normal(ks[4], (num_genres, emb_size), jnp.float32),
        "bg": jnp.zeros((1, emb_size), jnp.float32),
        "w1": scale * jax.random.normal(ks[5], (emb_size * 3, hl_size), jnp.float32),
        "b1": jnp.zeros((1, hl_size), jnp.float32),
        "w2": scale * jax.random.normal(ks[6], (hl_size, 1), jnp.float32),
        "b2": jnp.zeros((1, 1), jnp.float32),
    }


def reference_forward(user_idx, movie_idx, genre_feats, params):
    """Pure-JAX f32 reference matching the PyTorch forward (eval mode)."""
    ue = params["user_emb"][user_idx]
    me = params["movie_emb"][movie_idx]
    ge = genre_feats @ params["wg"] + params["bg"][0]
    ub = params["user_bias"][user_idx][:, 0]
    mb = params["movie_bias"][movie_idx][:, 0]
    dot = jnp.sum(ue * me, axis=1)
    x = jnp.concatenate([ue, me, ge], axis=1)
    h = jax.nn.relu(x @ params["w1"] + params["b1"][0])
    mlp = (h @ params["w2"] + params["b2"][0])[:, 0]
    return dot + mlp + ub + mb + params["gbias"][0, 0]


if __name__ == "__main__":
    key = jax.random.PRNGKey(0)
    k_param, k_u, k_m, k_g = jax.random.split(key, 4)

    NUM_USERS, NUM_MOVIES, NUM_GENRES = 16, 24, 8
    HL_SIZE, EMB_SIZE = 64, 32
    BATCH = 8

    params = init_params(k_param, NUM_USERS, NUM_MOVIES, NUM_GENRES,
                         HL_SIZE, EMB_SIZE)

    user_idx = jax.random.randint(k_u, (BATCH,), 0, NUM_USERS)
    movie_idx = jax.random.randint(k_m, (BATCH,), 0, NUM_MOVIES)
    genre_feats = jax.random.bernoulli(
        k_g, 0.3, (BATCH, NUM_GENRES)).astype(jnp.float32)

    fwd = jax.jit(movie_rec_forward)
    out = fwd(user_idx, movie_idx, genre_feats, params)
    out = jax.block_until_ready(out)

    ref = reference_forward(user_idx, movie_idx, genre_feats, params)
    assert out.shape == (BATCH,)
    # bf16 storage/MXU inputs -> relaxed tolerance vs the f32 reference.
    assert jnp.allclose(out, ref, atol=3e-2, rtol=3e-2), (out, ref)

    print("KERNEL_OK")
</pallas_src>

<mosaic_0001>
module attributes {stable_mosaic.version = 11 : i64} {
  func.func @movie_rec_kernel(%arg0: i32, %arg1: memref<8x32xbf16, #tpu.memory_space<vmem>>, %arg2: memref<8x32xbf16, #tpu.memory_space<vmem>>, %arg3: memref<8x8xbf16, #tpu.memory_space<vmem>>, %arg4: memref<8x1xf32, #tpu.memory_space<vmem>>, %arg5: memref<32x64xbf16, #tpu.memory_space<vmem>>, %arg6: memref<32x64xbf16, #tpu.memory_space<vmem>>, %arg7: memref<8x64xbf16, #tpu.memory_space<vmem>>, %arg8: memref<1x64xf32, #tpu.memory_space<vmem>>, %arg9: memref<1x64xf32, #tpu.memory_space<vmem>>, %arg10: memref<8x1xf32, #tpu.memory_space<vmem>>) attributes {dimension_semantics = [#tpu.dimension_semantics<parallel>], iteration_bounds = array<i64: 1>, scalar_prefetch = 0 : i64, scratch_operands = 0 : i64, tpu.core_type = #tpu.core_type<tc>, window_params = [{transform_indices = @transform_0, window_bounds = array<i64: 8, 32>}, {transform_indices = @transform_1, window_bounds = array<i64: 8, 32>}, {transform_indices = @transform_2, window_bounds = array<i64: 8, 8>}, {transform_indices = @transform_3, window_bounds = array<i64: 8, 1>}, {pipeline_mode = #tpu.pipeline_mode<synchronous>, transform_indices = @transform_4, window_bounds = array<i64: 32, 64>}, {pipeline_mode = #tpu.pipeline_mode<synchronous>, transform_indices = @transform_5, window_bounds = array<i64: 32, 64>}, {pipeline_mode = #tpu.pipeline_mode<synchronous>, transform_indices = @transform_6, window_bounds = array<i64: 8, 64>}, {pipeline_mode = #tpu.pipeline_mode<synchronous>, transform_indices = @transform_7, window_bounds = array<i64: 1, 64>}, {pipeline_mode = #tpu.pipeline_mode<synchronous>, transform_indices = @transform_8, window_bounds = array<i64: 1, 64>}, {transform_indices = @transform_9, window_bounds = array<i64: 8, 1>}]} {
    %c0 = arith.constant 0 : index
    %c0_0 = arith.constant 0 : index
    %0 = vector.load %arg1[%c0, %c0_0] : memref<8x32xbf16, #tpu.memory_space<vmem>>, vector<8x32xbf16>
    %c0_1 = arith.constant 0 : index
    %c0_2 = arith.constant 0 : index
    %1 = vector.load %arg2[%c0_1, %c0_2] : memref<8x32xbf16, #tpu.memory_space<vmem>>, vector<8x32xbf16>
    %c0_3 = arith.constant 0 : index
    %c0_4 = arith.constant 0 : index
    %2 = vector.load %arg3[%c0_3, %c0_4] : memref<8x8xbf16, #tpu.memory_space<vmem>>, vector<8x8xbf16>
    %3 = arith.extf %0 : vector<8x32xbf16> to vector<8x32xf32>
    %4 = arith.extf %1 : vector<8x32xbf16> to vector<8x32xf32>
    %5 = arith.mulf %3, %4 : vector<8x32xf32>
    %cst = arith.constant dense<0.000000e+00> : vector<8xf32>
    %6 = vector.multi_reduction <add>, %5, %cst [1] : vector<8x32xf32> to vector<8xf32>
    %7 = vector.shape_cast %6 : vector<8xf32> to vector<8x1xf32>
    %c0_5 = arith.constant 0 : index
    %c0_6 = arith.constant 0 : index
    %8 = vector.load %arg5[%c0_5, %c0_6] : memref<32x64xbf16, #tpu.memory_space<vmem>>, vector<32x64xbf16>
    %cst_7 = arith.constant dense<0.000000e+00> : vector<8x64xf32>
    %9 = tpu.matmul %0, %8, %cst_7 {dimension_numbers = #tpu.dot_dimension_numbers<[1], [0], [0], [1], [0, 0, 1, 1], [], []>} : vector<8x32xbf16>, vector<32x64xbf16>, vector<8x64xf32> -> vector<8x64xf32>
    %c0_8 = arith.constant 0 : index
    %c0_9 = arith.constant 0 : index
    %10 = vector.load %arg6[%c0_8, %c0_9] : memref<32x64xbf16, #tpu.memory_space<vmem>>, vector<32x64xbf16>
    %cst_10 = arith.constant dense<0.000000e+00> : vector<8x64xf32>
    %11 = tpu.matmul %1, %10, %cst_10 {dimension_numbers = #tpu.dot_dimension_numbers<[1], [0], [0], [1], [0, 0, 1, 1], [], []>} : vector<8x32xbf16>, vector<32x64xbf16>, vector<8x64xf32> -> vector<8x64xf32>
    %12 = arith.addf %9, %11 : vector<8x64xf32>
    %c0_11 = arith.constant 0 : index
    %c0_12 = arith.constant 0 : index
    %13 = vector.load %arg7[%c0_11, %c0_12] : memref<8x64xbf16, #tpu.memory_space<vmem>>, vector<8x64xbf16>
    %cst_13 = arith.constant dense<0.000000e+00> : vector<8x64xf32>
    %14 = tpu.matmul %2, %13, %cst_13 {dimension_numbers = #tpu.dot_dimension_numbers<[1], [0], [0], [1], [0, 0, 1, 1], [], []>} : vector<8x8xbf16>, vector<8x64xbf16>, vector<8x64xf32> -> vector<8x64xf32>
    %15 = arith.addf %12, %14 : vector<8x64xf32>
    %c0_14 = arith.constant 0 : index
    %c0_15 = arith.constant 0 : index
    %16 = vector.load %arg8[%c0_14, %c0_15] : memref<1x64xf32, #tpu.memory_space<vmem>>, vector<1x64xf32>
    %17 = vector.broadcast %16 : vector<1x64xf32> to vector<8x64xf32>
    %18 = arith.addf %15, %17 : vector<8x64xf32>
    %cst_16 = arith.constant 0.000000e+00 : f32
    %19 = vector.broadcast %cst_16 : f32 to vector<8x64xf32>
    %20 = arith.maximumf %18, %19 : vector<8x64xf32>
    %c0_17 = arith.constant 0 : index
    %c0_18 = arith.constant 0 : index
    %21 = vector.load %arg9[%c0_17, %c0_18] : memref<1x64xf32, #tpu.memory_space<vmem>>, vector<1x64xf32>
    %22 = vector.broadcast %21 : vector<1x64xf32> to vector<8x64xf32>
    %23 = arith.mulf %20, %22 : vector<8x64xf32>
    %cst_19 = arith.constant dense<0.000000e+00> : vector<8xf32>
    %24 = vector.multi_reduction <add>, %23, %cst_19 [1] : vector<8x64xf32> to vector<8xf32>
    %25 = vector.shape_cast %24 : vector<8xf32> to vector<8x1xf32>
    %26 = arith.addf %7, %25 : vector<8x1xf32>
    %c0_20 = arith.constant 0 : index
    %c0_21 = arith.constant 0 : index
    %27 = vector.load %arg4[%c0_20, %c0_21] : memref<8x1xf32, #tpu.memory_space<vmem>>, vector<8x1xf32>
    %28 = arith.addf %26, %27 : vector<8x1xf32>
    %c0_22 = arith.constant 0 : index
    %c0_23 = arith.constant 0 : index
    %29 = vector.load %arg10[%c0_22, %c0_23] : memref<8x1xf32, #tpu.memory_space<vmem>>, vector<8x1xf32>
    tpu.vector_store %arg10[%c0_22, %c0_23], %28 {strides = array<i32>} : memref<8x1xf32, #tpu.memory_space<vmem>>, vector<8x1xf32>,
    return
  }
  func.func @transform_0(%arg0: i32) -> (i32, i32) {
    %c0_i32 = arith.constant 0 : i32
    %c0_i32_0 = arith.constant 0 : i32
    return %arg0, %c0_i32 : i32, i32
  }
  func.func @transform_1(%arg0: i32) -> (i32, i32) {
    %c0_i32 = arith.constant 0 : i32
    %c0_i32_0 = arith.constant 0 : i32
    return %arg0, %c0_i32 : i32, i32
  }
  func.func @transform_2(%arg0: i32) -> (i32, i32) {
    %c0_i32 = arith.constant 0 : i32
    %c0_i32_0 = arith.constant 0 : i32
    return %arg0, %c0_i32 : i32, i32
  }
  func.func @transform_3(%arg0: i32) -> (i32, i32) {
    %c0_i32 = arith.constant 0 : i32
    %c0_i32_0 = arith.constant 0 : i32
    return %arg0, %c0_i32 : i32, i32
  }
  func.func @transform_4(%arg0: i32) -> (i32, i32) {
    %c0_i32 = arith.constant 0 : i32
    %c0_i32_0 = arith.constant 0 : i32
    %c0_i32_1 = arith.constant 0 : i32
    return %c0_i32, %c0_i32_0 : i32, i32
  }
  func.func @transform_5(%arg0: i32) -> (i32, i32) {
    %c0_i32 = arith.constant 0 : i32
    %c0_i32_0 = arith.constant 0 : i32
    %c0_i32_1 = arith.constant 0 : i32
    return %c0_i32, %c0_i32_0 : i32, i32
  }
  func.func @transform_6(%arg0: i32) -> (i32, i32) {
    %c0_i32 = arith.constant 0 : i32
    %c0_i32_0 = arith.constant 0 : i32
    %c0_i32_1 = arith.constant 0 : i32
    return %c0_i32, %c0_i32_0 : i32, i32
  }
  func.func @transform_7(%arg0: i32) -> (i32, i32) {
    %c0_i32 = arith.constant 0 : i32
    %c0_i32_0 = arith.constant 0 : i32
    %c0_i32_1 = arith.constant 0 : i32
    return %c0_i32, %c0_i32_0 : i32, i32
  }
  func.func @transform_8(%arg0: i32) -> (i32, i32) {
    %c0_i32 = arith.constant 0 : i32
    %c0_i32_0 = arith.constant 0 : i32
    %c0_i32_1 = arith.constant 0 : i32
    return %c0_i32, %c0_i32_0 : i32, i32
  }
  func.func @transform_9(%arg0: i32) -> (i32, i32) {
    %c0_i32 = arith.constant 0 : i32
    %c0_i32_0 = arith.constant 0 : i32
    return %arg0, %c0_i32 : i32, i32
  }
}

</mosaic_0001>

<bundles_post_ra>
// kernel: movie_rec_forward.1
= control target key start
LH: loop header
LB: loop body
LE: loop exit
PB: predicated region body
PF: predicated region fallthrough
CT: control target
= control target key end

     0   :  { %v286_v0 = vmov 0.0   ;;  %vm287_vm0 = vmmov 0   ;;  %vm166_vm1 = vcmask 1043456   ;;  %vm39_vm2 = vcmask 261120   ;;  %s380_s5 = inlined_call_operand.vmem [shape: bf16[32,64], index: 5, kind: input, shape index: {}]   ;;  %s381_s4 = inlined_call_operand.vmem [shape: bf16[32,64], index: 4, kind: input, shape index: {}]   ;;  %s382_s6 = inlined_call_operand.vmem [shape: bf16[8,64], index: 6, kind: input, shape index: {}]   ;;  %s383_s1 = inlined_call_operand.vmem [shape: bf16[8,32], index: 1, kind: input, shape index: {}]   ;;  %s384_s0 = inlined_call_operand.vmem [shape: bf16[8,32], index: 0, kind: input, shape index: {}]   ;;  %s385_s2 = inlined_call_operand.vmem [shape: bf16[8,8], index: 2, kind: input, shape index: {}]   ;;  %s386_s7 = inlined_call_operand.vmem [shape: f32[1,64], index: 7, kind: input, shape index: {}]   ;;  %s387_s8 = inlined_call_operand.vmem [shape: f32[1,64], index: 8, kind: input, shape index: {}]   ;;  %s388_s3 = inlined_call_operand.vmem [shape: f32[8,1], index: 3, kind: input, shape index: {}]   ;;  %s389_s9 = inlined_call_operand.vmem [shape: f32[8,1], index: 9, kind: output, shape index: {}]  }
   0x1   :  { %258 = vmatprep.subr.bf16.mxu0 %v286_v0  ;;  %v282_v1 = vld [vmem:[%s380_s5] sm:$0xff]   ;;  %266 = vmatprep.subr.bf16.mxu1 %v286_v0  ;;  %v284_v3 = vld [vmem:[%s380_s5 + $0x8] sm:$0xff]   ;;  %vm162_vm3 = vcmask 64512   ;;  %vm228_vm4 = vcmask 523264   ;;  %vm235_vm5 = vcmask 7168  }
   0x2   :  { %v283_v2 = vld [vmem:[%s381_s4] sm:$0xff]   ;;  %262 = vmatprep.mubr.msk.bf16.mxu0 %vm287_vm0, %v286_v0  ;;  %270 = vmatprep.mubr.msk.bf16.mxu1 %vm287_vm0, %v286_v0  ;;  %v285_v4 = vld [vmem:[%s381_s4 + $0x8] sm:$0xff]  }
   0x3   :  { %259 = vmatpush3.bf16.msra.mxu0 %v282_v1  ;;  %267 = vmatpush3.bf16.msra.mxu1 %v283_v2  ;;  %v161_v5 = vld [vmem:[%s382_s6] sm:$0xf] }
   0x4   :  { %260 = vmatprep.subr.bf16.mxu0 %v286_v0  ;;  %268 = vmatprep.subr.bf16.mxu1 %v286_v0  ;;  %v34_v6 = vld [vmem:[%s383_s1] sm:$0xf]  ;;  %v168_v8 = vsel %vm166_vm1, %v161_v5, 0 }
   0x5   :  { %v33_v7 = vld [vmem:[%s384_s0] sm:$0xf]  ;;  %v37_v11 = vunpack.c.l.bf16 %v34_v6 }
   0x6   :  { %v35_v9 = vld [vmem:[%s385_s2] sm:$0xf]  ;;  %v36_v10 = vunpack.c.l.bf16 %v33_v7 }
   0x7   :  { %261 = vmatpush3.bf16.msra.mxu0 %v284_v3  ;;  %269 = vmatpush3.bf16.msra.mxu1 %v285_v4  ;;  %v248_v24 = vld [vmem:[%s386_s7] ss:$0 sm:$0xff] }
   0x8   :  { %274 = vmatprep.subr.bf16.mxu0 %v286_v0  ;;  %v38_v12 = vmul.f32 %v37_v11, %v36_v10  ;;  %v249_v30 = vld [vmem:[%s387_s8] ss:$0 sm:$0xff] }
   0x9   :  { %v233_v35 = vld [vmem:[%s388_s3] sm:$0xff] }
   0xa   :  { %263 = vmatmul.mubr.msk.bf16.vlgmr.msra.gmra.mrb[0].mxu0 %vm39_vm2, %v34_v6  ;;  %271 = vmatmul.mubr.msk.bf16.vlgmr.msra.gmra.mrb[0].mxu1 %vm39_vm2, %v33_v7  ;;  %v40_v13 = vsel %vm39_vm2, %v38_v12, 0.0 }
   0xb   :  { %275 = vmatpush3.bf16.msra.mxu0 %v168_v8  ;;  %276 = vmatprep.mubr.msk.bf16.mxu0 %vm287_vm0, %v286_v0 }
   0xc   :  { %41 = vadd.xlane.f32.xlu0 %v40_v13 }
  0x12   :  { %277 = vmatmul.mubr.msk.bf16.vlgmr.msra.gmra.mrb[4].mxu0 %vm162_vm3, %v35_v9 }
  0x99   :  { %v42_v34 = vpop.xlane.xlu0 %41 }
  0xdd   :  { %v100_v14 = vpop.f32.mrb[0].mxu0  ;;  %v155_v16 = vpop.f32.mrb[0].mxu1 }
  0xde   :  { %v264_v15 = vpop.f32.mrb[1].mxu0  ;;  %v156_v17 = vadd.f32 %v155_v16, %v100_v14  ;;  %v272_v19 = vpop.f32.mrb[1].mxu1 }
  0xdf   :  { %v103_v18 = vpop.f32.mrb[2].mxu0  ;;  %v158_v21 = vpop.f32.mrb[2].mxu1 }
  0xe0   :  { %v265_v20 = vpop.f32.mrb[3].mxu0  ;;  %v273_v22 = vpop.f32.mrb[3].mxu1 }
  0xe5   :  { %v204_v23 = vpop.f32.mrb[4].mxu0 }
  0xe6   :  { %v210_v25 = vadd.f32 %v204_v23, %v156_v17  ;;  %v278_v26 = vpop.f32.mrb[5].mxu0 }
  0xe7   :  { %v207_v27 = vpop.f32.mrb[6].mxu0 }
  0xe8   :  { %v218_v28 = vadd.f32 %v248_v24, %v210_v25  ;;  %v279_v29 = vpop.f32.mrb[7].mxu0 }
  0xea   :  { %v219_v31 = vmax.f32 %v218_v28, 0.0 }
  0xec   :  { %v227_v32 = vmul.f32 %v249_v30, %v219_v31 }
  0xee   :  { %v229_v33 = vsel %vm228_vm4, %v227_v32, 0.0 }
  0xef   :  { %230 = vadd.xlane.f32.xlu0 %v229_v33 }
 0x17c   :  { %v231_v36 = vpop.xlane.xlu0 %230 }
 0x17d   :  { %v232_v37 = vadd.f32 %v231_v36, %v42_v34 }
 0x17f   :  { %v234_v38 = vadd.f32 %v233_v35, %v232_v37 }
 0x181   :  { %236 = vst.msk [vmem:[%s389_s9] sm:$0xff] %vm235_vm5, %v234_v38 }

</bundles_post_ra>
